<compile_context>
chip_gen: v5e
topology: v5e:2x2
jax: 0.10.0
libtpu: 0.0.40
codegen_flags: <defaults>
</compile_context>

<pallas_src>
import math

import jax
import jax.numpy as jnp
from jax.experimental import pallas as pl
from jax.experimental.pallas import tpu as pltpu


def _gelu(v):
    # tanh-approx GELU (VPU + EUP tanh on TPU)
    c = math.sqrt(2.0 / math.pi)
    return 0.5 * v * (1.0 + jnp.tanh(c * (v + 0.044715 * v * v * v)))


def dgcn_batch_kernel(a_ref, x_ref, wd_t_ref, wr_t_ref, out_ref):
    A = a_ref[0]            # (N, N)   zero-padded adjacency for this graph
    x = x_ref[0]            # (N, Fp)  zero-padded node features
    wd_t = wd_t_ref[...]    # (Fp, Fp) diffusion weight, transposed, zero-padded
    wr_t = wr_t_ref[...]    # (Fp, Fp) retained  weight, transposed, zero-padded

    # Degrees (single XLU row-sum). Guard zero-degree (padded) rows so the EUP
    # rsqrt stays finite; those rows/cols of A are all-zero so they contribute
    # nothing to real nodes and their own outputs stay exactly zero.
    d = jnp.sum(A, axis=1, keepdims=True)                   # (N, 1)
    inv_sqrt = jax.lax.rsqrt(jnp.where(d > 0.0, d, 1.0))    # (N, 1)

    def sym_prop(h):
        # L_sym @ h = h - 0.5 * D^{-1/2} (A + A^T) D^{-1/2} h
        # computed without materializing eye / L_sym / A^T.
        hp = inv_sqrt * h                                    # fold right D^{-1/2}
        s_h = jnp.dot(A, hp, preferred_element_type=jnp.float32)
        s_h = s_h + jax.lax.dot_general(                     # A^T @ hp, same A tile
            A, hp, (((0,), (0,)), ((), ())),
            preferred_element_type=jnp.float32)
        return h - 0.5 * (inv_sqrt * s_h)                    # left D^{-1/2} + identity

    # two diffusion layers
    h1 = _gelu(jnp.dot(x, wd_t, preferred_element_type=jnp.float32))
    x2 = _gelu(jnp.dot(x, wr_t, preferred_element_type=jnp.float32) + sym_prop(h1))
    h2 = _gelu(jnp.dot(x2, wd_t, preferred_element_type=jnp.float32))
    out_ref[0] = _gelu(x2 + sym_prop(h2)).astype(out_ref.dtype)


def global_graph_propagation(nodes, graphs, passage_length, w_diffusion, w_retained):
    """GlobalGraphPropagation.forward.

    nodes:  list of (n_i, F) arrays, graphs: list of (n_i, n_i) arrays,
    passage_length: list of n_i.  Returns (B, max(passage_length), F),
    zero-padded, exactly like the PyTorch module.
    """
    B = len(graphs)
    F = nodes[0].shape[1]
    max_n = max(passage_length)

    # Pad node dim to a multiple of 8 (sublane) and feature dim to a multiple
    # of 128 (lane-dense MXU + unmasked stores).
    n_pad = max(8, ((max_n + 7) // 8) * 8)
    f_pad = max(128, ((F + 127) // 128) * 128)

    A = jnp.zeros((B, n_pad, n_pad), dtype=jnp.float32)
    X = jnp.zeros((B, n_pad, f_pad), dtype=jnp.float32)
    for b, (g, nd, ln) in enumerate(zip(graphs, nodes, passage_length)):
        A = A.at[b, :ln, :ln].set(g.astype(jnp.float32))
        X = X.at[b, :ln, :F].set(nd.astype(jnp.float32))

    wd_t = jnp.zeros((f_pad, f_pad), dtype=jnp.float32).at[:F, :F].set(
        jnp.asarray(w_diffusion, dtype=jnp.float32).T)
    wr_t = jnp.zeros((f_pad, f_pad), dtype=jnp.float32).at[:F, :F].set(
        jnp.asarray(w_retained, dtype=jnp.float32).T)

    # VMEM budget: A/x/out double-buffered + resident weights + temporaries.
    need = 4 * (2 * n_pad * n_pad + 4 * n_pad * f_pad
                + 4 * f_pad * f_pad + 10 * n_pad * f_pad)
    vmem_limit = int(min(48 * 2**20, max(16 * 2**20, 2 * need)))

    cost = pl.CostEstimate(
        flops=int(B * (8 * n_pad * n_pad * f_pad + 6 * n_pad * f_pad * f_pad)),
        transcendentals=int(B * (4 * n_pad * f_pad + n_pad)),
        bytes_accessed=int(B * 4 * (n_pad * n_pad + 2 * n_pad * f_pad)
                           + 8 * f_pad * f_pad),
    )

    out = pl.pallas_call(
        dgcn_batch_kernel,
        out_shape=jax.ShapeDtypeStruct((B, n_pad, f_pad), jnp.float32),
        grid_spec=pltpu.PrefetchScalarGridSpec(
            num_scalar_prefetch=0,
            grid=(B,),
            in_specs=[
                pl.BlockSpec((1, n_pad, n_pad), lambda b: (b, 0, 0)),   # A (per graph)
                pl.BlockSpec((1, n_pad, f_pad), lambda b: (b, 0, 0)),   # x (per graph)
                pl.BlockSpec((f_pad, f_pad), lambda b: (0, 0)),         # Wd^T resident
                pl.BlockSpec((f_pad, f_pad), lambda b: (0, 0)),         # Wr^T resident
            ],
            out_specs=pl.BlockSpec((1, n_pad, f_pad), lambda b: (b, 0, 0)),
        ),
        compiler_params=pltpu.CompilerParams(
            dimension_semantics=("parallel",),
            vmem_limit_bytes=vmem_limit,
        ),
        cost_estimate=cost,
    )(A, X, wd_t, wr_t)

    # Slice away the node / feature padding (padded entries are exactly zero,
    # matching the module's post-GNN zero-padding to max_passage_num).
    return out[:, :max_n, :F]


def dgcn_reference(A, x, w_diffusion, w_retained):
    """Pure-JAX reference mirroring the PyTorch DGCN formula (P = D^-1 A form)."""
    d = A.sum(axis=1)
    P = A / d[:, None]
    sd, isd = jnp.sqrt(d), 1.0 / jnp.sqrt(d)
    term1 = sd[:, None] * (P * isd[None, :])
    term2 = isd[:, None] * (P.T * sd[None, :])
    L_sym = jnp.eye(A.shape[0], dtype=A.dtype) - 0.5 * (term1 + term2)

    h1 = _gelu(x @ w_diffusion.T)
    x2 = _gelu(x @ w_retained.T + L_sym @ h1)
    h2 = _gelu(x2 @ w_diffusion.T)
    return _gelu(x2 + L_sym @ h2)


if __name__ == "__main__":
    hidden = 32                      # hidden_size (feature dim)
    passage_length = [5, 8]          # two documents with 5 and 8 passages

    key = jax.random.PRNGKey(0)
    k_wd, k_wr, key = jax.random.split(key, 3)
    # nn.Linear(hidden, hidden, bias=False).weight ~ N(0, 0.05) per init_weights
    w_diffusion = 0.05 * jax.random.normal(k_wd, (hidden, hidden), dtype=jnp.float32)
    w_retained = 0.05 * jax.random.normal(k_wr, (hidden, hidden), dtype=jnp.float32)

    graphs, nodes = [], []
    for n in passage_length:
        k_g, k_n, key = jax.random.split(key, 3)
        # strictly positive adjacency so every real node has out-degree > 0
        graphs.append(jax.random.uniform(k_g, (n, n), dtype=jnp.float32,
                                         minval=0.1, maxval=1.0))
        nodes.append(jax.random.normal(k_n, (n, hidden), dtype=jnp.float32))

    out = global_graph_propagation(nodes, graphs, passage_length,
                                   w_diffusion, w_retained)
    out = jax.block_until_ready(out)

    # reference: run each graph through the un-simplified formula, then pad
    max_n = max(passage_length)
    ref_rows = []
    for g, nd, n in zip(graphs, nodes, passage_length):
        r = dgcn_reference(g, nd, w_diffusion, w_retained)
        pad = jnp.zeros((max_n - n, hidden), dtype=jnp.float32)
        ref_rows.append(jnp.concatenate([r, pad], axis=0)[None])
    ref = jnp.concatenate(ref_rows, axis=0)

    assert out.shape == (len(passage_length), max_n, hidden)
    assert jnp.allclose(out, ref, atol=1e-4, rtol=1e-3), "mismatch vs JAX reference"
    print("KERNEL_OK")
</pallas_src>

<mosaic_0001>
module attributes {stable_mosaic.version = 11 : i64} {
  func.func @dgcn_batch_kernel(%arg0: i32, %arg1: memref<1x8x8xf32, #tpu.memory_space<vmem>>, %arg2: memref<1x8x128xf32, #tpu.memory_space<vmem>>, %arg3: memref<128x128xf32, #tpu.memory_space<vmem>>, %arg4: memref<128x128xf32, #tpu.memory_space<vmem>>, %arg5: memref<1x8x128xf32, #tpu.memory_space<vmem>>) attributes {dimension_semantics = [#tpu.dimension_semantics<parallel>], iteration_bounds = array<i64: 2>, scalar_prefetch = 0 : i64, scratch_operands = 0 : i64, tpu.core_type = #tpu.core_type<tc>, window_params = [{transform_indices = @transform_0, window_bounds = array<i64: 1, 8, 8>}, {transform_indices = @transform_1, window_bounds = array<i64: 1, 8, 128>}, {pipeline_mode = #tpu.pipeline_mode<synchronous>, transform_indices = @transform_2, window_bounds = array<i64: 128, 128>}, {pipeline_mode = #tpu.pipeline_mode<synchronous>, transform_indices = @transform_3, window_bounds = array<i64: 128, 128>}, {transform_indices = @transform_4, window_bounds = array<i64: 1, 8, 128>}]} {
    %c0 = arith.constant 0 : index
    %c0_0 = arith.constant 0 : index
    %c0_1 = arith.constant 0 : index
    %0 = vector.load %arg1[%c0, %c0_0, %c0_1] : memref<1x8x8xf32, #tpu.memory_space<vmem>>, vector<1x8x8xf32>
    %1 = vector.shape_cast %0 : vector<1x8x8xf32> to vector<8x8xf32>
    %c0_2 = arith.constant 0 : index
    %c0_3 = arith.constant 0 : index
    %c0_4 = arith.constant 0 : index
    %2 = vector.load %arg2[%c0_2, %c0_3, %c0_4] : memref<1x8x128xf32, #tpu.memory_space<vmem>>, vector<1x8x128xf32>
    %3 = vector.shape_cast %2 : vector<1x8x128xf32> to vector<8x128xf32>
    %c0_5 = arith.constant 0 : index
    %c0_6 = arith.constant 0 : index
    %4 = vector.load %arg3[%c0_5, %c0_6] : memref<128x128xf32, #tpu.memory_space<vmem>>, vector<128x128xf32>
    %c0_7 = arith.constant 0 : index
    %c0_8 = arith.constant 0 : index
    %5 = vector.load %arg4[%c0_7, %c0_8] : memref<128x128xf32, #tpu.memory_space<vmem>>, vector<128x128xf32>
    %cst = arith.constant dense<0.000000e+00> : vector<8xf32>
    %6 = vector.multi_reduction <add>, %1, %cst [1] : vector<8x8xf32> to vector<8xf32>
    %7 = vector.shape_cast %6 : vector<8xf32> to vector<8x1xf32>
    %cst_9 = arith.constant 0.000000e+00 : f32
    %8 = vector.broadcast %cst_9 : f32 to vector<8x1xf32>
    %9 = arith.cmpf ogt, %7, %8 : vector<8x1xf32>
    %cst_10 = arith.constant 1.000000e+00 : f32
    %10 = vector.broadcast %cst_10 : f32 to vector<8x1xf32>
    %11 = arith.select %9, %7, %10 : vector<8x1xi1>, vector<8x1xf32>
    %12 = math.rsqrt %11 : vector<8x1xf32>
    %cst_11 = arith.constant dense<0.000000e+00> : vector<8x128xf32>
    %13 = tpu.matmul %3, %4, %cst_11 {dimension_numbers = #tpu.dot_dimension_numbers<[1], [0], [0], [1], [0, 0, 1, 1], [], []>} : vector<8x128xf32>, vector<128x128xf32>, vector<8x128xf32> -> vector<8x128xf32>
    %cst_12 = arith.constant 5.000000e-01 : f32
    %14 = vector.broadcast %cst_12 : f32 to vector<8x128xf32>
    %15 = arith.mulf %14, %13 : vector<8x128xf32>
    %cst_13 = arith.constant 4.471500e-02 : f32
    %16 = vector.broadcast %cst_13 : f32 to vector<8x128xf32>
    %17 = arith.mulf %16, %13 : vector<8x128xf32>
    %18 = arith.mulf %17, %13 : vector<8x128xf32>
    %19 = arith.mulf %18, %13 : vector<8x128xf32>
    %20 = arith.addf %13, %19 : vector<8x128xf32>
    %cst_14 = arith.constant 0.797884583 : f32
    %21 = vector.broadcast %cst_14 : f32 to vector<8x128xf32>
    %22 = arith.mulf %21, %20 : vector<8x128xf32>
    %23 = math.tanh %22 : vector<8x128xf32>
    %cst_15 = arith.constant 1.000000e+00 : f32
    %24 = vector.broadcast %cst_15 : f32 to vector<8x128xf32>
    %25 = arith.addf %24, %23 : vector<8x128xf32>
    %26 = arith.mulf %15, %25 : vector<8x128xf32>
    %cst_16 = arith.constant dense<0.000000e+00> : vector<8x128xf32>
    %27 = tpu.matmul %3, %5, %cst_16 {dimension_numbers = #tpu.dot_dimension_numbers<[1], [0], [0], [1], [0, 0, 1, 1], [], []>} : vector<8x128xf32>, vector<128x128xf32>, vector<8x128xf32> -> vector<8x128xf32>
    %28 = vector.broadcast %12 : vector<8x1xf32> to vector<8x128xf32>
    %29 = arith.mulf %28, %26 : vector<8x128xf32>
    %cst_17 = arith.constant dense<0.000000e+00> : vector<8x128xf32>
    %30 = tpu.matmul %1, %29, %cst_17 {dimension_numbers = #tpu.dot_dimension_numbers<[1], [0], [0], [1], [0, 0, 1, 1], [], []>} : vector<8x8xf32>, vector<8x128xf32>, vector<8x128xf32> -> vector<8x128xf32>
    %cst_18 = arith.constant dense<0.000000e+00> : vector<8x128xf32>
    %31 = tpu.matmul %1, %29, %cst_18 {dimension_numbers = #tpu.dot_dimension_numbers<[0], [0], [1], [1], [0, 1, 1, 1], [], []>} : vector<8x8xf32>, vector<8x128xf32>, vector<8x128xf32> -> vector<8x128xf32>
    %32 = arith.addf %30, %31 : vector<8x128xf32>
    %33 = vector.broadcast %12 : vector<8x1xf32> to vector<8x128xf32>
    %34 = arith.mulf %33, %32 : vector<8x128xf32>
    %cst_19 = arith.constant 5.000000e-01 : f32
    %35 = vector.broadcast %cst_19 : f32 to vector<8x128xf32>
    %36 = arith.mulf %35, %34 : vector<8x128xf32>
    %37 = arith.subf %26, %36 : vector<8x128xf32>
    %38 = arith.addf %27, %37 : vector<8x128xf32>
    %cst_20 = arith.constant 5.000000e-01 : f32
    %39 = vector.broadcast %cst_20 : f32 to vector<8x128xf32>
    %40 = arith.mulf %39, %38 : vector<8x128xf32>
    %cst_21 = arith.constant 4.471500e-02 : f32
    %41 = vector.broadcast %cst_21 : f32 to vector<8x128xf32>
    %42 = arith.mulf %41, %38 : vector<8x128xf32>
    %43 = arith.mulf %42, %38 : vector<8x128xf32>
    %44 = arith.mulf %43, %38 : vector<8x128xf32>
    %45 = arith.addf %38, %44 : vector<8x128xf32>
    %cst_22 = arith.constant 0.797884583 : f32
    %46 = vector.broadcast %cst_22 : f32 to vector<8x128xf32>
    %47 = arith.mulf %46, %45 : vector<8x128xf32>
    %48 = math.tanh %47 : vector<8x128xf32>
    %cst_23 = arith.constant 1.000000e+00 : f32
    %49 = vector.broadcast %cst_23 : f32 to vector<8x128xf32>
    %50 = arith.addf %49, %48 : vector<8x128xf32>
    %51 = arith.mulf %40, %50 : vector<8x128xf32>
    %cst_24 = arith.constant dense<0.000000e+00> : vector<8x128xf32>
    %52 = tpu.matmul %51, %4, %cst_24 {dimension_numbers = #tpu.dot_dimension_numbers<[1], [0], [0], [1], [0, 0, 1, 1], [], []>} : vector<8x128xf32>, vector<128x128xf32>, vector<8x128xf32> -> vector<8x128xf32>
    %cst_25 = arith.constant 5.000000e-01 : f32
    %53 = vector.broadcast %cst_25 : f32 to vector<8x128xf32>
    %54 = arith.mulf %53, %52 : vector<8x128xf32>
    %cst_26 = arith.constant 4.471500e-02 : f32
    %55 = vector.broadcast %cst_26 : f32 to vector<8x128xf32>
    %56 = arith.mulf %55, %52 : vector<8x128xf32>
    %57 = arith.mulf %56, %52 : vector<8x128xf32>
    %58 = arith.mulf %57, %52 : vector<8x128xf32>
    %59 = arith.addf %52, %58 : vector<8x128xf32>
    %cst_27 = arith.constant 0.797884583 : f32
    %60 = vector.broadcast %cst_27 : f32 to vector<8x128xf32>
    %61 = arith.mulf %60, %59 : vector<8x128xf32>
    %62 = math.tanh %61 : vector<8x128xf32>
    %cst_28 = arith.constant 1.000000e+00 : f32
    %63 = vector.broadcast %cst_28 : f32 to vector<8x128xf32>
    %64 = arith.addf %63, %62 : vector<8x128xf32>
    %65 = arith.mulf %54, %64 : vector<8x128xf32>
    %66 = vector.broadcast %12 : vector<8x1xf32> to vector<8x128xf32>
    %67 = arith.mulf %66, %65 : vector<8x128xf32>
    %cst_29 = arith.constant dense<0.000000e+00> : vector<8x128xf32>
    %68 = tpu.matmul %1, %67, %cst_29 {dimension_numbers = #tpu.dot_dimension_numbers<[1], [0], [0], [1], [0, 0, 1, 1], [], []>} : vector<8x8xf32>, vector<8x128xf32>, vector<8x128xf32> -> vector<8x128xf32>
    %cst_30 = arith.constant dense<0.000000e+00> : vector<8x128xf32>
    %69 = tpu.matmul %1, %67, %cst_30 {dimension_numbers = #tpu.dot_dimension_numbers<[0], [0], [1], [1], [0, 1, 1, 1], [], []>} : vector<8x8xf32>, vector<8x128xf32>, vector<8x128xf32> -> vector<8x128xf32>
    %70 = arith.addf %68, %69 : vector<8x128xf32>
    %71 = vector.broadcast %12 : vector<8x1xf32> to vector<8x128xf32>
    %72 = arith.mulf %71, %70 : vector<8x128xf32>
    %cst_31 = arith.constant 5.000000e-01 : f32
    %73 = vector.broadcast %cst_31 : f32 to vector<8x128xf32>
    %74 = arith.mulf %73, %72 : vector<8x128xf32>
    %75 = arith.subf %65, %74 : vector<8x128xf32>
    %76 = arith.addf %51, %75 : vector<8x128xf32>
    %cst_32 = arith.constant 5.000000e-01 : f32
    %77 = vector.broadcast %cst_32 : f32 to vector<8x128xf32>
    %78 = arith.mulf %77, %76 : vector<8x128xf32>
    %cst_33 = arith.constant 4.471500e-02 : f32
    %79 = vector.broadcast %cst_33 : f32 to vector<8x128xf32>
    %80 = arith.mulf %79, %76 : vector<8x128xf32>
    %81 = arith.mulf %80, %76 : vector<8x128xf32>
    %82 = arith.mulf %81, %76 : vector<8x128xf32>
    %83 = arith.addf %76, %82 : vector<8x128xf32>
    %cst_34 = arith.constant 0.797884583 : f32
    %84 = vector.broadcast %cst_34 : f32 to vector<8x128xf32>
    %85 = arith.mulf %84, %83 : vector<8x128xf32>
    %86 = math.tanh %85 : vector<8x128xf32>
    %cst_35 = arith.constant 1.000000e+00 : f32
    %87 = vector.broadcast %cst_35 : f32 to vector<8x128xf32>
    %88 = arith.addf %87, %86 : vector<8x128xf32>
    %89 = arith.mulf %78, %88 : vector<8x128xf32>
    %c0_36 = arith.constant 0 : index
    %c0_37 = arith.constant 0 : index
    %c0_38 = arith.constant 0 : index
    %90 = vector.load %arg5[%c0_36, %c0_37, %c0_38] : memref<1x8x128xf32, #tpu.memory_space<vmem>>, vector<1x8x128xf32>
    %91 = vector.shape_cast %90 : vector<1x8x128xf32> to vector<8x128xf32>
    %92 = vector.shape_cast %89 : vector<8x128xf32> to vector<1x8x128xf32>
    tpu.vector_store %arg5[%c0_36, %c0_37, %c0_38], %92 {strides = array<i32>} : memref<1x8x128xf32, #tpu.memory_space<vmem>>, vector<1x8x128xf32>,
    return
  }
  func.func @transform_0(%arg0: i32) -> (i32, i32, i32) {
    %c0_i32 = arith.constant 0 : i32
    %c0_i32_0 = arith.constant 0 : i32
    %c0_i32_1 = arith.constant 0 : i32
    return %arg0, %c0_i32, %c0_i32_0 : i32, i32, i32
  }
  func.func @transform_1(%arg0: i32) -> (i32, i32, i32) {
    %c0_i32 = arith.constant 0 : i32
    %c0_i32_0 = arith.constant 0 : i32
    %c0_i32_1 = arith.constant 0 : i32
    return %arg0, %c0_i32, %c0_i32_0 : i32, i32, i32
  }
  func.func @transform_2(%arg0: i32) -> (i32, i32) {
    %c0_i32 = arith.constant 0 : i32
    %c0_i32_0 = arith.constant 0 : i32
    %c0_i32_1 = arith.constant 0 : i32
    return %c0_i32, %c0_i32_0 : i32, i32
  }
  func.func @transform_3(%arg0: i32) -> (i32, i32) {
    %c0_i32 = arith.constant 0 : i32
    %c0_i32_0 = arith.constant 0 : i32
    %c0_i32_1 = arith.constant 0 : i32
    return %c0_i32, %c0_i32_0 : i32, i32
  }
  func.func @transform_4(%arg0: i32) -> (i32, i32, i32) {
    %c0_i32 = arith.constant 0 : i32
    %c0_i32_0 = arith.constant 0 : i32
    %c0_i32_1 = arith.constant 0 : i32
    return %arg0, %c0_i32, %c0_i32_0 : i32, i32, i32
  }
}

</mosaic_0001>

<bundles_post_ra>
// kernel: tpu_custom_call.1
= control target key start
LH: loop header
LB: loop body
LE: loop exit
PB: predicated region body
PF: predicated region fallthrough
CT: control target
= control target key end

     0   :  { %s1224_s0 = inlined_call_operand.hbm [shape: f32[2,8,8], index: 0, kind: input, shape index: {}]   ;;  %s1225_s1 = inlined_call_operand.hbm [shape: f32[2,8,128], index: 1, kind: input, shape index: {}]   ;;  %s1226_s2 = inlined_call_operand.hbm [shape: f32[128,128], index: 2, kind: input, shape index: {}]   ;;  %s1227_s3 = inlined_call_operand.hbm [shape: f32[128,128], index: 3, kind: input, shape index: {}]   ;;  %s1228_s4 = inlined_call_operand.hbm [shape: f32[2,8,128], index: 4, kind: output, shape index: {}]  }
   0x1   :  { %1229 = sst [smem:[#allocation17_spill]] %s1226_s2 }
   0x2   :  { %1230 = sst [smem:[#allocation18_spill]] %s1227_s3 }
   0x3   :  { %9 = vsyncpa [#allocation3], 0 }
   0x4   :  { %11 = vsyncpa [#allocation3 + $0x1], 0 }
   0x5   :  { %12 = vsyncpa [#allocation6], 0 }
   0x6   :  { %14 = vsyncpa [#allocation6 + $0x1], 0 }
   0x7   :  { %15 = vsyncpa [#allocation9], 0 }
   0x8   :  { %16 = vsyncpa [#allocation4], 0 }
   0x9   :  { %18 = vsyncpa [#allocation4 + $0x1], 0  ;;  %s1026_s15 = smov 0   ;;  %s1028_s16 = smov 0  }
   0xa   :  { %s1030_s17 = smov 0   ;;  %s1032_s18 = smov 0  }
   0xb LB: > { %s1231_s2 = sld [smem:[#allocation17_spill]]  ;;  %s1050_s22 = sadd.s32 4294967295, %s995_s18   ;;  %s995_s18 = sphi %s1032_s18, %s1245_s18   ;;  %s991_s17 = sphi %s1030_s17, %s1244_s17   ;;  %s987_s16 = sphi %s1028_s16, %s1243_s16   ;;  %s983_s15 = sphi %s1026_s15, %s1242_s15  }
   0xc   : > { %p690_p0 = scmp.ge.s32.totalorder %s995_s18, 1  ;;  %p45_p1 = scmp.eq.s32.totalorder %s1050_s22, 0 }
   0xd   : > { %p149_p2 = scmp.lt.s32.totalorder %s995_s18, 3  ;;  %s997_s24 = smov [#allocation7]  }
   0xe   : > { %s162_s25 = sshll.u32 %s997_s24, 4  ;;  %s1233_s3 = sld [smem:[#allocation18_spill]]  ;;  %s163_s25 = int_to_ptr.vmem [resolvable:$true] %s162_s25 }
   0xf   : > { %p1055_p3 = pnand %p690_p0, %p149_p2  ;;  %s998_s29 = smov [#allocation8]  }
  0x10   : > { %s176_s30 = sshll.u32 %s998_s29, 4  ;;  %s999_s5 = smov 128   ;;  %s177_s30 = int_to_ptr.vmem [resolvable:$true] %s176_s30 }
  0x11   : > { %s160_s21 = sshll.u32 %s1231_s2, 4  ;;  %p726_p4 = pneg %p1055_p3  ;;  %s161_s21 = int_to_ptr.hbm [resolvable:$true] %s160_s21 }
  0x12   : > { %s1000_s6 = smov 8   ;;  %s689_s7 = sadd.s32 4294967294, %s995_s18  }
  0x13   : > { %p727_p6 = pnand %p726_p4, %p45_p1  ;;  %s1069_s8 = sadd.s32 1, %s995_s18  }
  0x14   : > { %s174_s28 = sshll.u32 %s1233_s3, 4  ;;  %s28_s9 = ssub.s32 %s995_s18, %s1069_s8  ;;  %s175_s28 = int_to_ptr.hbm [resolvable:$true] %s174_s28 }
  0x15   : > { %729 = dma.hbm_to_vmem [thread:$0]  (!%p727_p6), %s161_s21, 2048, %s163_s25, [#allocation6], %s999_s5, %s999_s5, %s1000_s6  }
  0x16   : > { %732 = dma.hbm_to_vmem [thread:$0]  (!%p727_p6), %s175_s28, 2048, %s177_s30, [#allocation9], %s999_s5, %s999_s5, %s1000_s6  }
  0x17   : > { %s31_s10 = sadd.s32 1, %s991_s17  ;;  %p29_p7 = scmp.eq.s32.totalorder %s28_s9, 0 }
  0x18   : > { %p38_p8 = scmp.ne.s32.totalorder %s991_s17, %s987_s16  ;;  %p39_p9 = scmp.eq.s32.totalorder %s995_s18, 0 }
  0x19   : > { %p44_p10 = scmp.ne.s32.totalorder %s987_s16, %s983_s15  ;;  %p136_p13 = scmp.eq.s32.totalorder %s1050_s22, 1 }
  0x1a   : > { %s1080_s11 = scalar_select %p29_p7, %s991_s17, %s31_s10  }
  0x1b   : > { %p1082_p11 = por %p39_p9, %p38_p8  ;;  %p1088_p12 = por %p45_p1, %p44_p10 }
  0x1c   : > { %1234 = sst [smem:[#allocation16_spill]] %s1080_s11  ;;  %p142_p0 = scmp.eq.s32.totalorder %s689_s7, 1 }
  0x1d   : > { %p746_p2 = scmp.lt.s32.totalorder %s995_s18, 2  ;;  %s190_s14 = sand.u32 1, %s991_s17  }
  0x1e   : > { %p1095_p4 = por %p136_p13, %p38_p8  ;;  %p1099_p6 = por %p142_p0, %p44_p10 }
  0x1f   : > { %s1103_s21 = sshll.u32 %s190_s14, 3  ;;  %s695_s24 = sshll.u32 %s995_s18, 3 }
  0x20   : > { %s198_s27 = scalar_lea.hbm %s1224_s0, %s695_s24  ;;  %s194_s28 = scalar_lea.vmem [#allocation2], %s1103_s21 }
  0x21   : > { %s202_s29 = sshll.u32 %s194_s28, 4  ;;  %s200_s30 = sshll.u32 %s198_s27, 4  ;;  %s203_s29 = int_to_ptr.vmem [resolvable:$true] %s202_s29  ;;  %s201_s30 = int_to_ptr.hbm [resolvable:$true] %s200_s30 }
  0x22   : > { %p1112_p7 = pnand %p746_p2, %p1082_p11  ;;  %s217_s9 = scalar_lea.hbm %s1225_s1, %s695_s24 }
  0x23   : > { %s209_s10 = sand.u32 1, %s995_s18   ;;  %s191_s2 = scalar_lea.sflag [#allocation3], %s190_s14 }
  0x24   : > { %s857_s25 = sshra.s32 %s201_s30, 4  ;;  %p861_p9 = pneg %p1112_p7  ;;  %s858_s25 = int_to_ptr.hbm [resolvable:$true] %s857_s25 }
  0x25   : > { %s859_s26 = scalar_lea.hbm %s858_s25, 8  ;;  %s864_s28 = scalar_lea.hbm %s1224_s0, 16 }
  0x26   : > { %p860_p8 = scmp.ne.s32.totalorder %s858_s25, %s859_s26  ;;  %p865_p13 = scmp.lt.s32.totalorder %s858_s25, %s1224_s0 }
  0x27   : > { %p866_p0 = scmp.lt.s32.totalorder %s864_s28, %s859_s26 }
  0x28   : > { %p862_p10 = pnand %p861_p9, %p860_p8 }
  0x29   : > { %p867_p2 = por %p866_p0, %p865_p13 }
  0x2a   : > { %p863_p11 = pneg %p862_p10 }
  0x2c   : > { %p868_p5 = pnand %p867_p2, %p863_p11 }
  0x2e   : > { %871 = shalt.err (!%p868_p5)
}
  0x2f   : > { %736 = dma.hbm_to_vmem [thread:$0]  (!%p1112_p7), %s201_s30, 128, %s203_s29, %s191_s2  }
  0x30   : > { %s219_s14 = sshll.u32 %s217_s9, 4  ;;  %s213_s24 = scalar_lea.vmem [#allocation5], %s1103_s21  ;;  %s220_s14 = int_to_ptr.hbm [resolvable:$true] %s219_s14 }
  0x31   : > { %s221_s3 = sshll.u32 %s213_s24, 4  ;;  %s210_s12 = scalar_lea.sflag [#allocation6], %s209_s10  ;;  %s222_s3 = int_to_ptr.vmem [resolvable:$true] %s221_s3 }
  0x32   : > { %s887_s27 = sshra.s32 %s220_s14, 4  ;;  %s894_s28 = scalar_lea.hbm %s1225_s1, 16  ;;  %s888_s27 = int_to_ptr.hbm [resolvable:$true] %s887_s27 }
  0x33   : > { %s889_s11 = scalar_lea.hbm %s888_s27, 8  ;;  %p895_p5 = scmp.lt.s32.totalorder %s888_s27, %s1225_s1 }
  0x34   : > { %p890_p8 = scmp.ne.s32.totalorder %s888_s27, %s889_s11  ;;  %p896_p13 = scmp.lt.s32.totalorder %s894_s28, %s889_s11 }
  0x36   : > { %p892_p10 = pnand %p890_p8, %p861_p9  ;;  %p897_p0 = por %p896_p13, %p895_p5 }
  0x38   : > { %p893_p11 = pneg %p892_p10 }
  0x3a   : > { %p898_p2 = pnand %p897_p0, %p893_p11 }
  0x3c   : > { %901 = shalt.err (!%p898_p2)
}
  0x3d   : > { %739 = dma.hbm_to_vmem [thread:$0]  (!%p1112_p7), %s220_s14, 128, %s222_s3, %s210_s12  }
  0x3e   : > { %230 = sbr.rel (%p1055_p3) target bundleno = 778 (0x30a), region = 36  ;;  %s1148_s21 = sand.u32 (!%p1055_p3), 1, %s987_s16  }
  0x3f   : > { %s1151_s29 = sshll.u32 (!%p1055_p3), %s1148_s21, 3  ;;  %s233_s30 = scalar_lea.sflag (!%p1055_p3), [#allocation3], %s1148_s21 }
  0x40   : > { %s236_s11 = scalar_lea.vmem (!%p1055_p3), [#allocation2], %s1151_s29 }
  0x43   : > { %962 = dma.done.wait (%p1088_p12), %s233_s30, 128  }
  0x44   : > { %964 = vsyncadd (%p1088_p12), %s233_s30, 4294967168  ;;  %s242_s3 = sand.u32 1, %s1050_s22   ;;  %s246_s5 = scalar_lea.vmem [#allocation5], %s1151_s29 }
  0x45   : > { %s243_s23 = scalar_lea.sflag [#allocation6], %s242_s3 }
  0x46   : > { %966 = dma.done.wait (%p1088_p12), %s243_s23, 128  }
  0x47   : > { %968 = vsyncadd (%p1088_p12), %s243_s23, 4294967168 }
  0x48   : > { %970 = dma.done.wait (%p45_p1), [#allocation6], 2048  }
  0x49   : > { %972 = vsyncadd (%p45_p1), [#allocation6], 4294965248 }
  0x4a   : > { %974 = dma.done.wait (%p45_p1), [#allocation9], 2048  }
  0x4b   : > { %976 = vsyncadd (%p45_p1), [#allocation9], 4294965248  ;;  %vm321_vm0 = vcmask 64512   ;;  %v304_v0 = vld [vmem:[#allocation7 + $0x78] sm:$0xff]  ;;  %v1173_v1 = vld [vmem:[%s236_s11] sm:$0xff]  ;;  %s709_s13 = sshll.u32 %s1050_s22, 3 }
  0x4c   : > { %v303_v2 = vld [vmem:[#allocation7 + $0x70] sm:$0xff]  ;;  %337 = vmatpush.msra.mxu0 %v304_v0  ;;  %v322_v3 = vsel %vm321_vm0, %v1173_v1, 0.0  ;;  %477 = vmatpush.msra.mxu1 %v304_v0  ;;  %v302_v4 = vld [vmem:[#allocation7 + $0x68] sm:$0xff]  ;;  %v301_v5 = vld [vmem:[#allocation7 + $0x60] sm:$0xff]  ;;  %s572_s7 = scalar_lea.hbm %s1228_s4, %s709_s13  ;;  %s286_s14 = scalar_lea.vmem [#allocation10], %s1151_s29 }
  0x4d   : > { %323 = vadd.xlane.f32.xlu0 %v322_v3  ;;  %v300_v6 = vld [vmem:[#allocation7 + $0x58] sm:$0xff]  ;;  %v299_v7 = vld [vmem:[#allocation7 + $0x50] sm:$0xff]  ;;  %v298_v8 = vld [vmem:[#allocation7 + $0x48] sm:$0xff]  ;;  %s574_s24 = sshll.u32 %s286_s14, 4  ;;  %s576_s12 = sshll.u32 %s572_s7, 4  ;;  %s575_s24 = int_to_ptr.vmem [resolvable:$true] %s574_s24  ;;  %s577_s12 = int_to_ptr.hbm [resolvable:$true] %s576_s12 }
  0x4e   : > { %338 = vmatpush.msra.mxu0 %v303_v2  ;;  %478 = vmatpush.msra.mxu1 %v303_v2  ;;  %v297_v9 = vld [vmem:[#allocation7 + $0x40] sm:$0xff]  ;;  %v296_v10 = vld [vmem:[#allocation7 + $0x38] sm:$0xff]  ;;  %v295_v11 = vld [vmem:[#allocation7 + $0x30] sm:$0xff]  ;;  %s562_s27 = scalar_lea.sflag [#allocation4], %s1148_s21  ;;  %s931_s25 = sshra.s32 %s577_s12, 4  ;;  %s932_s25 = int_to_ptr.hbm [resolvable:$true] %s931_s25 }
  0x4f   : > { %v294_v12 = vld [vmem:[#allocation7 + $0x28] sm:$0xff]  ;;  %v293_v13 = vld [vmem:[#allocation7 + $0x20] sm:$0xff]  ;;  %v292_v14 = vld [vmem:[#allocation7 + $0x18] sm:$0xff]  ;;  %s933_s26 = scalar_lea.hbm %s932_s25, 8  ;;  %s937_s6 = scalar_lea.hbm %s1228_s4, 16 }
  0x50   : > { %339 = vmatpush.msra.mxu0 %v302_v4  ;;  %479 = vmatpush.msra.mxu1 %v302_v4  ;;  %v291_v15 = vld [vmem:[#allocation7 + $0x10] sm:$0xff]  ;;  %v290_v16 = vld [vmem:[#allocation7 + $0x8] sm:$0xff]  ;;  %v289_v17 = vld [vmem:[#allocation7] sm:$0xff]  ;;  %p934_p1 = scmp.ne.s32.totalorder %s932_s25, %s933_s26  ;;  %p938_p7 = scmp.lt.s32.totalorder %s932_s25, %s1228_s4 }
  0x51   : > { %v1179_v18 = vld [vmem:[%s246_s5] sm:$0xff]  ;;  %v318_v23 = vld [vmem:[#allocation8 + $0x68] sm:$0xff]  ;;  %v317_v24 = vld [vmem:[#allocation8 + $0x60] sm:$0xff]  ;;  %p939_p9 = scmp.lt.s32.totalorder %s937_s6, %s933_s26 }
  0x52   : > { %340 = vmatpush.msra.mxu0 %v301_v5  ;;  %480 = vmatpush.msra.mxu1 %v301_v5  ;;  %v320_v21 = vld [vmem:[#allocation8 + $0x78] sm:$0xff]  ;;  %v319_v22 = vld [vmem:[#allocation8 + $0x70] sm:$0xff]  ;;  %v314_v32 = vld [vmem:[#allocation8 + $0x48] sm:$0xff]  ;;  %p935_p3 = pnand %p934_p1, %p1095_p4 }
  0x53   : > { %448 = vmatpush.msra.mxu3 %v320_v21  ;;  %v316_v26 = vld [vmem:[#allocation8 + $0x58] sm:$0xff]  ;;  %v315_v30 = vld [vmem:[#allocation8 + $0x50] sm:$0xff]  ;;  %v313_v35 = vld [vmem:[#allocation8 + $0x40] sm:$0xff]  ;;  %p940_p8 = por %p939_p9, %p938_p7 }
  0x54   : > { %341 = vmatpush.msra.mxu0 %v300_v6  ;;  %481 = vmatpush.msra.mxu1 %v300_v6  ;;  %v312_v44 = vld [vmem:[#allocation8 + $0x38] sm:$0xff]  ;;  %v311_v45 = vld [vmem:[#allocation8 + $0x30] sm:$0xff]  ;;  %v310_v48 = vld [vmem:[#allocation8 + $0x28] sm:$0xff]  ;;  %p936_p12 = pneg %p935_p3 }
  0x55   : > { %449 = vmatpush.msra.mxu3 %v319_v22  ;;  %v309_v50 = vld [vmem:[#allocation8 + $0x20] sm:$0xff]  ;;  %v308_v51 = vld [vmem:[#allocation8 + $0x18] sm:$0xff]  ;;  %v307_v52 = vld [vmem:[#allocation8 + $0x10] sm:$0xff] }
  0x56   : > { %342 = vmatpush.msra.mxu0 %v299_v7  ;;  %482 = vmatpush.msra.mxu1 %v299_v7  ;;  %v306_v53 = vld [vmem:[#allocation8 + $0x8] sm:$0xff]  ;;  %v305_v54 = vld [vmem:[#allocation8] sm:$0xff]  ;;  %p941_p10 = pnand %p940_p8, %p936_p12 }
  0x57   : > { %450 = vmatpush.msra.mxu3 %v318_v23 }
  0x58   : > { %343 = vmatpush.msra.mxu0 %v298_v8  ;;  %483 = vmatpush.msra.mxu1 %v298_v8 }
  0x59   : > { %451 = vmatpush.msra.mxu3 %v317_v24 }
  0x5a   : > { %344 = vmatpush.msra.mxu0 %v297_v9  ;;  %484 = vmatpush.msra.mxu1 %v297_v9 }
  0x5b   : > { %452 = vmatpush.msra.mxu3 %v316_v26 }
  0x5c   : > { %345 = vmatpush.msra.mxu0 %v296_v10  ;;  %485 = vmatpush.msra.mxu1 %v296_v10 }
  0x5d   : > { %453 = vmatpush.msra.mxu3 %v315_v30 }
  0x5e   : > { %346 = vmatpush.msra.mxu0 %v295_v11  ;;  %486 = vmatpush.msra.mxu1 %v295_v11 }
  0x5f   : > { %454 = vmatpush.msra.mxu3 %v314_v32 }
  0x60   : > { %347 = vmatpush.msra.mxu0 %v294_v12  ;;  %487 = vmatpush.msra.mxu1 %v294_v12 }
  0x61   : > { %455 = vmatpush.msra.mxu3 %v313_v35 }
  0x62   : > { %348 = vmatpush.msra.mxu0 %v293_v13  ;;  %488 = vmatpush.msra.mxu1 %v293_v13 }
  0x63   : > { %456 = vmatpush.msra.mxu3 %v312_v44 }
  0x64   : > { %349 = vmatpush.msra.mxu0 %v292_v14  ;;  %489 = vmatpush.msra.mxu1 %v292_v14 }
  0x65   : > { %457 = vmatpush.msra.mxu3 %v311_v45 }
  0x66   : > { %350 = vmatpush.msra.mxu0 %v291_v15  ;;  %490 = vmatpush.msra.mxu1 %v291_v15 }
  0x67   : > { %458 = vmatpush.msra.mxu3 %v310_v48 }
  0x68   : > { %351 = vmatpush.msra.mxu0 %v290_v16  ;;  %491 = vmatpush.msra.mxu1 %v290_v16 }
  0x69   : > { %459 = vmatpush.msra.mxu3 %v309_v50 }
  0x6a   : > { %352 = vmatpush.msra.mxu0 %v289_v17  ;;  %492 = vmatpush.msra.mxu1 %v289_v17 }
  0x6b   : > { %353 = vmatmul.f32.vlgmr.msra.gmra.mxu0 %v1179_v18  ;;  %460 = vmatpush.msra.mxu3 %v308_v51 }
  0x6d   : > { %461 = vmatpush.msra.mxu3 %v307_v52 }
  0x6f   : > { %462 = vmatpush.msra.mxu3 %v306_v53 }
  0x71   : > { %463 = vmatpush.msra.mxu3 %v305_v54 }
  0x72   : > { %464 = vmatmul.f32.vlgmr.msra.gmra.mxu3 %v1179_v18 }
  0x76   : > { %367 = vxpose.xlu0.b32.start.end [1/1] (short) (narrow) %v1173_v1, 8 }
  0xc0   : > { %v324_v19 = vpop.xlane.xlu0 %323 }
  0xc1   : > { %vm325_vm1 = vcmp.gt.f32.partialorder %v324_v19, 0.0 }
  0xc2   : > { %v326_v20 = vsel %vm325_vm1, %v324_v19, 1.0 }
  0xc3   : > { %787 = vrsqrt.f32 %v326_v20  ;;  %vm333_vm3 = vweird.f32 %v326_v20 }
  0xc9   : > { %v788_v25 = vpop.eup %787 }
  0xca   : > { %v328_v28 = vmul.f32 %v788_v25, %v326_v20  ;;  %vm334_vm2 = vweird.f32 %v788_v25 }
  0xcb   : > { %vm335_vm4 = vmor %vm333_vm3, %vm334_vm2 }
  0xcc   : > { %v329_v33 = vmul.f32 %v788_v25, %v328_v28 }
  0xce   : > { %v330_v37 = vmul.f32 0.5, %v329_v33 }
  0xd0   : > { %v331_v39 = vsub.f32 1.5, %v330_v37 }
  0xd2   : > { %v332_v42 = vmul.f32 %v788_v25, %v331_v39 }
  0xd4   : > { %v336_v47 = vsel %vm335_vm4, %v788_v25, %v332_v42 }
  0xe8   : > { %v354_v27 = vpop.f32.mrf.mxu0 }
  0xe9   : > { %v358_v29 = vmul.f32 0.044715, %v354_v27  ;;  %v357_v40 = vmul.f32 0.5, %v354_v27 }
  0xeb   : > { %v359_v31 = vmul.f32 %v358_v29, %v354_v27 }
  0xed   : > { %v360_v34 = vmul.f32 %v359_v31, %v354_v27 }
  0xef   : > { %v361_v36 = vadd.f32 %v360_v34, %v354_v27 }
  0xf1   : > { %v362_v38 = vmul.f32 0.7978846, %v361_v36 }
  0xf3   : > { %789 = vtanh.f32 %v362_v38 }
  0xf5   : > { %v465_v61 = vpop.f32.mrf.mxu3 }
  0xf9   : > { %v790_v41 = vpop.eup %789 }
  0xfa   : > { %v364_v43 = vadd.f32 1.0, %v790_v41 }
  0xfc   : > { %v365_v46 = vmul.f32 %v364_v43, %v357_v40 }
  0xfe   : > { %v366_v49 = vmul.f32 %v365_v46, %v336_v47 }
 0x100   : > { %417 = vmatpush.msra.mxu2 %v366_v49 }
 0x102   : > { %440 = vmatpush.msrb.mxu2 %v366_v49 }
 0x11a   : > { %v383_v55 = vpop.trf.xlu0 }
 0x11b   : > { %704 = vmatmul.msk.f32.vlgmr.msra.gmra.mxu2 %vm321_vm0, %v383_v55 }
 0x123   : > { %705 = vmatmul.msk.f32.vlgmr.msrb.gmra.mxu2 %vm321_vm0, %v1173_v1 }
 0x19e   : > { %v419_v56 = vpop.f32.mrf.mxu2 }
 0x1a6   : > { %v442_v57 = vpop.f32.mrf.mxu2 }
 0x1a7   : > { %v443_v58 = vadd.f32 %v442_v57, %v419_v56 }
 0x1a9   : > { %v445_v59 = vmul.f32 %v443_v58, %v336_v47 }
 0x1ab   : > { %v446_v60 = vmul.f32 0.5, %v445_v59 }
 0x1ad   : > { %v447_v62 = vsub.f32 %v365_v46, %v446_v60 }
 0x1af   : > { %v466_v63 = vadd.f32 %v465_v61, %v447_v62 }
 0x1b1   : > { %v469_v0 = vmul.f32 0.044715, %v466_v63  ;;  %v468_v7 = vmul.f32 0.5, %v466_v63 }
 0x1b3   : > { %v470_v2 = vmul.f32 %v469_v0, %v466_v63 }
 0x1b5   : > { %v471_v3 = vmul.f32 %v470_v2, %v466_v63 }
 0x1b7   : > { %v472_v4 = vadd.f32 %v471_v3, %v466_v63 }
 0x1b9   : > { %v473_v5 = vmul.f32 0.7978846, %v472_v4 }
 0x1bb   : > { %791 = vtanh.f32 %v473_v5 }
 0x1c1   : > { %v792_v6 = vpop.eup %791 }
 0x1c2   : > { %v475_v8 = vadd.f32 1.0, %v792_v6 }
 0x1c4   : > { %v476_v9 = vmul.f32 %v475_v8, %v468_v7 }
 0x1c6   : > { %493 = vmatmul.f32.vlgmr.msra.gmra.mxu1 %v476_v9 }
 0x243   : > { %v494_v10 = vpop.f32.mrf.mxu1 }
 0x244   : > { %v498_v11 = vmul.f32 0.044715, %v494_v10  ;;  %v497_v17 = vmul.f32 0.5, %v494_v10 }
 0x246   : > { %v499_v12 = vmul.f32 %v498_v11, %v494_v10 }
 0x248   : > { %v500_v13 = vmul.f32 %v499_v12, %v494_v10 }
 0x24a   : > { %v501_v14 = vadd.f32 %v500_v13, %v494_v10 }
 0x24c   : > { %v502_v15 = vmul.f32 0.7978846, %v501_v14 }
 0x24e   : > { %793 = vtanh.f32 %v502_v15 }
 0x254   : > { %v794_v16 = vpop.eup %793 }
 0x255   : > { %v504_v18 = vadd.f32 1.0, %v794_v16 }
 0x257   : > { %v505_v19 = vmul.f32 %v504_v18, %v497_v17 }
 0x259   : > { %v506_v20 = vmul.f32 %v505_v19, %v336_v47 }
 0x25b   : > { %522 = vmatpush.msra.mxu2 %v506_v20 }
 0x25c   : > { %706 = vmatmul.msk.f32.vlgmr.msra.gmra.mxu2 %vm321_vm0, %v383_v55 }
 0x25d   : > { %542 = vmatpush.msrb.mxu2 %v506_v20 }
 0x264   : > { %707 = vmatmul.msk.f32.vlgmr.msrb.gmra.mxu2 %vm321_vm0, %v1173_v1 }
 0x2df   : > { %v524_v21 = vpop.f32.mrf.mxu2 }
 0x2e7   : > { %v544_v22 = vpop.f32.mrf.mxu2 }
 0x2e8   : > { %v545_v23 = vadd.f32 %v544_v22, %v524_v21 }
 0x2ea   : > { %v547_v24 = vmul.f32 %v545_v23, %v336_v47 }
 0x2ec   : > { %v548_v25 = vmul.f32 0.5, %v547_v24 }
 0x2ee   : > { %v549_v26 = vsub.f32 %v505_v19, %v548_v25 }
 0x2f0   : > { %v550_v27 = vadd.f32 %v549_v26, %v476_v9 }
 0x2f2   : > { %v552_v28 = vmul.f32 0.044715, %v550_v27  ;;  %v551_v33 = vmul.f32 0.5, %v550_v27 }
 0x2f4   : > { %v553_v29 = vmul.f32 %v552_v28, %v550_v27 }
 0x2f6   : > { %v554_v30 = vmul.f32 %v553_v29, %v550_v27 }
 0x2f8   : > { %v555_v31 = vadd.f32 %v554_v30, %v550_v27 }
 0x2fa   : > { %v556_v32 = vmul.f32 0.7978846, %v555_v31 }
 0x2fc   : > { %795 = vtanh.f32 %v556_v32 }
 0x302   : > { %v796_v1 = vpop.eup %795 }
 0x303   : > { %v558_v34 = vadd.f32 1.0, %v796_v1 }
 0x305   : > { %v559_v35 = vmul.f32 %v558_v34, %v551_v33 }
 0x307   : > { %560 = vst [vmem:[%s286_s14] sm:$0xff] %v559_v35 }
 0x308   : > { %944 = shalt.err (!%p941_p10)
}
 0x309   : > { %724 = dma.vmem_to_hbm [thread:$0]  (%p1095_p4), %s575_s24, 128, %s577_s12, %s562_s27  }
 0x30a PF: > { %s588_s21 = sand.u32 1, %s983_s15   ;;  %p1240_p11 = scmp.ge.s32.totalorder %s995_s18, 2 }
 0x30b   : > { %s589_s30 = scalar_lea.sflag [#allocation4], %s588_s21 }
 0x30c   : > { %p741_p5 = pnand %p1240_p11, %p1099_p6 }
 0x30e   : > { %p742_p13 = pneg %p741_p5 }
 0x310   : > { %978 = dma.done.wait (%p742_p13), %s589_s30, 128  }
 0x311   : > { %980 = vsyncadd (%p742_p13), %s589_s30, 4294967168  ;;  %s1241_s11 = sld [smem:[#allocation16_spill]]  ;;  %p21_p0 = scmp.ge.s32.totalorder %s1069_s8, 4  }
 0x312   : > { %s1242_s15 = smov %s987_s16  ;;  %s1243_s16 = smov %s991_s17 }
 0x313   : > { %s1245_s18 = smov %s1069_s8  ;;  %23 = sbr.rel (!%p21_p0) target bundleno = 11 (0xb), region = 102 }
 0x317   : > { %s1244_s17 = smov %s1241_s11 }
 0x318   :  { %595 = vsyncpa [#allocation3], 1 }
 0x319   :  { %597 = vsyncpa [#allocation3 + $0x1], 1 }
 0x31a   :  { %598 = vsyncpa [#allocation6], 1 }
 0x31b   :  { %600 = vsyncpa [#allocation6 + $0x1], 1 }
 0x31c   :  { %601 = vsyncpa [#allocation9], 1 }
 0x31d   :  { %602 = vsyncpa [#allocation4], 1 }
 0x31e   :  { %604 = vsyncpa [#allocation4 + $0x1], 1 }

</bundles_post_ra>
